<compile_context>
chip_gen: v5e
topology: v5e:2x2
jax: 0.10.0
libtpu: 0.0.40
codegen_flags: <defaults>
</compile_context>

<pallas_src>
import functools

import jax
import jax.numpy as jnp
from jax.experimental import pallas as pl
from jax.experimental.pallas import tpu as pltpu


# --------------------------------------------------------------------------
# static helpers
# --------------------------------------------------------------------------
def _swiglu_hidden(dim: int) -> int:
    hidden_features = int(dim * 4)
    hidden_features = (int(hidden_features * 2 / 3) + 7) // 8 * 8
    return hidden_features


def _round_up(x: int, m: int) -> int:
    return (x + m - 1) // m * m


def _vmem_capacity_bytes() -> int:
    """Physical VMEM per TensorCore; conservative 64 MiB if undetectable."""
    try:
        cap = int(pltpu.get_tpu_info().vmem_capacity_bytes)
        if cap > 0:
            return cap
    except Exception:
        pass
    try:
        kind = jax.devices()[0].device_kind.lower()
        if "v5" in kind or "v6" in kind:   # v5e/v5p/v6e: 128 MiB per TC
            return 128 * 2**20
    except Exception:
        pass
    return 64 * 2**20                      # v7x-safe default


def _num_tensorcores_per_chip() -> int:
    try:
        kind = jax.devices()[0].device_kind.lower()
    except Exception:
        return 1
    if "7" in kind or "v4" in kind or "v5p" in kind:
        return 2
    return 1


def _default_gate_dtype():
    # v5e has no bf16 VPU/EUP -> keep gate math in f32 there; v6e/v7x do bf16.
    try:
        kind = jax.devices()[0].device_kind.lower()
        if "v6" in kind or "7" in kind:
            return jnp.bfloat16
    except Exception:
        pass
    return jnp.float32


# --------------------------------------------------------------------------
# VMEM working-set estimators (conservative: count double buffers + temps)
# --------------------------------------------------------------------------
def _resident_vmem_bytes(tm, d_pad, h_pad, cb, ob, gb):
    weights = 2 * 3 * d_pad * h_pad * cb          # W1+W3+W_out (2x pipeline bufs)
    biases = 2 * (2 * h_pad + d_pad) * 4
    x_tile = 2 * tm * d_pad * cb
    o_tile = 2 * tm * d_pad * ob
    temps = tm * h_pad * (12 + gb + cb)           # h1, h3, sigmoid (f32) + gate
    return weights + biases + x_tile + o_tile + temps


def _chunked_vmem_bytes(tm, tk, d_pad, cb, ob, gb):
    weights = 2 * 3 * d_pad * tk * cb             # chunked W1/W3/W_out, 2x bufs
    biases = 2 * (2 * tk + d_pad) * 4
    x_tile = 2 * tm * d_pad * cb
    o_tile = 2 * tm * d_pad * ob
    acc = tm * d_pad * 4
    temps = tm * tk * (12 + gb + cb)
    return weights + biases + x_tile + o_tile + acc + temps


# --------------------------------------------------------------------------
# kernels
# --------------------------------------------------------------------------
def _swiglu_resident_kernel(x_ref, w1_ref, b1_ref, w3_ref, b3_ref,
                            w_out_ref, b_out_ref, o_ref, *, gate_dtype):
    # Weights-resident path: the whole (padded) hidden dim in one shot, no
    # accumulator; weights are DMA'd once per call (grid-constant index maps).
    x = x_ref[...]
    h1 = jnp.dot(x, w1_ref[...], preferred_element_type=jnp.float32) + b1_ref[...]
    h3 = jnp.dot(x, w3_ref[...], preferred_element_type=jnp.float32) + b3_ref[...]
    sig = jax.nn.sigmoid(h1)                      # f32 EUP path on all gens
    g = h1.astype(gate_dtype) * sig.astype(gate_dtype) * h3.astype(gate_dtype)
    o_ref[...] = (jnp.dot(g.astype(w_out_ref.dtype), w_out_ref[...],
                          preferred_element_type=jnp.float32)
                  + b_out_ref[...]).astype(o_ref.dtype)


def _swiglu_chunked_kernel(x_ref, w1_ref, b1_ref, w3_ref, b3_ref,
                           w_out_ref, b_out_ref, o_ref, acc_ref, *, gate_dtype):
    # Hidden-chunk reduction path: f32 accumulator resident across the k axis.
    k = pl.program_id(1)

    @pl.when(k == 0)
    def _():
        acc_ref[...] = jnp.zeros_like(acc_ref)

    x = x_ref[...]
    h1 = jnp.dot(x, w1_ref[...], preferred_element_type=jnp.float32) + b1_ref[...]
    h3 = jnp.dot(x, w3_ref[...], preferred_element_type=jnp.float32) + b3_ref[...]
    sig = jax.nn.sigmoid(h1)
    g = h1.astype(gate_dtype) * sig.astype(gate_dtype) * h3.astype(gate_dtype)
    acc_ref[...] += jnp.dot(g.astype(w_out_ref.dtype), w_out_ref[...],
                            preferred_element_type=jnp.float32)

    @pl.when(k == pl.num_programs(1) - 1)
    def _():
        o_ref[...] = (acc_ref[...] + b_out_ref[...]).astype(o_ref.dtype)


# --------------------------------------------------------------------------
# parameter preparation (hoisted off the hot path — do once at model init)
# --------------------------------------------------------------------------
def prepare_swiglu_params(w_in, b_in, w_out, b_out, *, tk=512,
                          compute_dtype=jnp.bfloat16):
    """Split W_in into gate/value halves, cast to bf16, zero-pad to lane width.

    Weights are stored (in_features, out_features), i.e. transposed vs PyTorch
    nn.Linear storage, so the kernel computes plain `x @ W + b`.
    Returns (w1p, b1p, w3p, b3p, w_out_p, b_out_p) for swiglu_ffn_padded.
    """
    D, two_h = w_in.shape
    H = w_out.shape[0]
    assert two_h == 2 * H and w_out.shape[1] == D

    D_pad = _round_up(D, 128)
    H_pad = _round_up(H, 128)
    tkr = max(128, _round_up(tk, 128))
    if tkr < H_pad:
        # Pad H up to a multiple of tk instead of shrinking tk at call time.
        H_pad = _round_up(H_pad, tkr)

    w1, w3 = w_in[:, :H], w_in[:, H:]
    b1, b3 = b_in[:H], b_in[H:]

    w1p = jnp.pad(w1.astype(compute_dtype), ((0, D_pad - D), (0, H_pad - H)))
    w3p = jnp.pad(w3.astype(compute_dtype), ((0, D_pad - D), (0, H_pad - H)))
    b1p = jnp.pad(b1.astype(jnp.float32), (0, H_pad - H)).reshape(1, H_pad)
    b3p = jnp.pad(b3.astype(jnp.float32), (0, H_pad - H)).reshape(1, H_pad)
    w_out_p = jnp.pad(w_out.astype(compute_dtype),
                      ((0, H_pad - H), (0, D_pad - D)))
    b_out_p = jnp.pad(b_out.astype(jnp.float32), (0, D_pad - D)).reshape(1, D_pad)
    return w1p, b1p, w3p, b3p, w_out_p, b_out_p


# --------------------------------------------------------------------------
# main entry point
# --------------------------------------------------------------------------
@functools.partial(jax.jit,
                   static_argnames=("tm", "tk", "weights_resident", "gate_dtype"))
def swiglu_ffn_padded(x, w1p, b1p, w3p, b3p, w_out_p, b_out_p, *,
                      tm=1024, tk=512, weights_resident=None, gate_dtype=None):
    """x: (B, S, D). Padded weights from prepare_swiglu_params()."""
    B, S, D = x.shape
    N = B * S
    D_pad, H_pad = w1p.shape
    compute_dtype = w1p.dtype
    cb = jnp.dtype(compute_dtype).itemsize
    ob = jnp.dtype(x.dtype).itemsize

    if gate_dtype is None:
        gate_dtype = _default_gate_dtype()
    gb = jnp.dtype(gate_dtype).itemsize

    # ---- static tiling decisions (all shapes are static at trace time) ----
    cap = _vmem_capacity_bytes()
    budget = min(int(cap * 7 // 8), cap - 4 * 2**20)   # leave on-chip headroom

    tm_eff = min(max(16, _round_up(tm, 16)), _round_up(N, 16))
    # On 2-TensorCore parts keep >= 2 row tiles so "parallel" shards across TCs.
    if _num_tensorcores_per_chip() >= 2 and N >= 1024:
        tm_eff = min(tm_eff, _round_up((N + 1) // 2, 16))

    if weights_resident is None:
        weights_resident = _resident_vmem_bytes(
            min(tm_eff, 512), D_pad, H_pad, cb, ob, gb) <= budget

    if weights_resident:
        while tm_eff > 16 and _resident_vmem_bytes(
                tm_eff, D_pad, H_pad, cb, ob, gb) > budget:
            tm_eff = max(16, _round_up(tm_eff // 2, 16))
        est = _resident_vmem_bytes(tm_eff, D_pad, H_pad, cb, ob, gb)
        tk_eff = H_pad
    else:
        tk_eff = min(max(128, _round_up(tk, 128)), H_pad)
        while H_pad % tk_eff:   # prep pads H to a tk multiple; safe fallback
            tk_eff -= 128
        while tm_eff > 16 and _chunked_vmem_bytes(
                tm_eff, tk_eff, D_pad, cb, ob, gb) > budget:
            tm_eff = max(16, _round_up(tm_eff // 2, 16))
        est = _chunked_vmem_bytes(tm_eff, tk_eff, D_pad, cb, ob, gb)

    vmem_limit = int(min(max(est * 5 // 4, 32 * 2**20), budget))

    N_pad = _round_up(N, tm_eff)
    xf = jnp.pad(x.reshape(N, D).astype(compute_dtype),
                 ((0, N_pad - N), (0, D_pad - D)))

    if weights_resident:
        # NOTE: weight index maps are grid-constant -> weights are DMA'd from
        # HBM exactly once per call. (pipeline_mode=pl.Buffered(1) would halve
        # their VMEM footprint; the budget above already counts 2 buffers.)
        kernel = functools.partial(_swiglu_resident_kernel, gate_dtype=gate_dtype)
        grid_spec = pltpu.PrefetchScalarGridSpec(
            num_scalar_prefetch=0,
            grid=(N_pad // tm_eff,),
            in_specs=[
                pl.BlockSpec((tm_eff, D_pad), lambda i: (i, 0)),     # x rows
                pl.BlockSpec((D_pad, H_pad), lambda i: (0, 0)),      # W1
                pl.BlockSpec((1, H_pad), lambda i: (0, 0)),          # b1
                pl.BlockSpec((D_pad, H_pad), lambda i: (0, 0)),      # W3
                pl.BlockSpec((1, H_pad), lambda i: (0, 0)),          # b3
                pl.BlockSpec((H_pad, D_pad), lambda i: (0, 0)),      # W_out
                pl.BlockSpec((1, D_pad), lambda i: (0, 0)),          # b_out
            ],
            out_specs=pl.BlockSpec((tm_eff, D_pad), lambda i: (i, 0)),
        )
        dims = ("parallel",)
    else:
        kernel = functools.partial(_swiglu_chunked_kernel, gate_dtype=gate_dtype)
        grid_spec = pltpu.PrefetchScalarGridSpec(
            num_scalar_prefetch=0,
            grid=(N_pad // tm_eff, H_pad // tk_eff),
            in_specs=[
                pl.BlockSpec((tm_eff, D_pad), lambda i, k: (i, 0)),   # x rows
                pl.BlockSpec((D_pad, tk_eff), lambda i, k: (0, k)),   # W1 chunk
                pl.BlockSpec((1, tk_eff), lambda i, k: (0, k)),       # b1 chunk
                pl.BlockSpec((D_pad, tk_eff), lambda i, k: (0, k)),   # W3 chunk
                pl.BlockSpec((1, tk_eff), lambda i, k: (0, k)),       # b3 chunk
                pl.BlockSpec((tk_eff, D_pad), lambda i, k: (k, 0)),   # W_out chunk
                pl.BlockSpec((1, D_pad), lambda i, k: (0, 0)),        # b_out
            ],
            out_specs=pl.BlockSpec((tm_eff, D_pad), lambda i, k: (i, 0)),
            scratch_shapes=[pltpu.VMEM((tm_eff, D_pad), jnp.float32)],
        )
        dims = ("parallel", "arbitrary")

    out = pl.pallas_call(
        kernel,
        out_shape=jax.ShapeDtypeStruct((N_pad, D_pad), x.dtype),
        grid_spec=grid_spec,
        compiler_params=pltpu.CompilerParams(
            dimension_semantics=dims,
            vmem_limit_bytes=vmem_limit),
    )(xf, w1p, b1p, w3p, b3p, w_out_p, b_out_p)

    return out[:N, :D].reshape(B, S, D)


def swiglu_ffn(x, w_in, b_in, w_out, b_out, *, tm=1024, tk=512,
               weights_resident=None, gate_dtype=None,
               compute_dtype=jnp.bfloat16):
    """Convenience wrapper (NOT the hot path: re-pads/casts weights per call).
    Production: call prepare_swiglu_params() once, then swiglu_ffn_padded()."""
    params = prepare_swiglu_params(w_in, b_in, w_out, b_out, tk=tk,
                                   compute_dtype=compute_dtype)
    return swiglu_ffn_padded(x, *params, tm=tm, tk=tk,
                             weights_resident=weights_resident,
                             gate_dtype=gate_dtype)


def reference_swiglu_ffn(x, w_in, b_in, w_out, b_out):
    h = jnp.einsum("bsd,dh->bsh", x, w_in) + b_in
    H = w_out.shape[0]
    x1, x2 = h[..., :H], h[..., H:]
    g = jax.nn.silu(x1) * x2
    return jnp.einsum("bsh,hd->bsd", g, w_out) + b_out


if __name__ == "__main__":
    # Small shapes consistent with the module: dim=96 -> hidden=256, 2*hidden=512.
    B, S, dim = 2, 8, 96
    hidden = _swiglu_hidden(dim)            # 256
    dtype = jnp.float32

    key = jax.random.PRNGKey(0)
    k_x, k_win, k_bin, k_wout, k_bout, k_x2 = jax.random.split(key, 6)

    x = jax.random.normal(k_x, (B, S, dim), dtype=dtype)
    # Deterministic synthetic parameters (stored as (in, out)).
    w_in = jax.random.normal(k_win, (dim, 2 * hidden), dtype=dtype) * 0.02
    b_in = jax.random.normal(k_bin, (2 * hidden,), dtype=dtype) * 0.02
    w_out = jax.random.normal(k_wout, (hidden, dim), dtype=dtype) * 0.02
    b_out = jax.random.normal(k_bout, (dim,), dtype=dtype) * 0.02

    ref = reference_swiglu_ffn(x, w_in, b_in, w_out, b_out)

    # Hot-path usage: prepare (split/cast/pad) once, then call per step.
    params = prepare_swiglu_params(w_in, b_in, w_out, b_out, tk=128)

    # 1) auto mode — tiny weights fit VMEM -> exercises the weights-resident path.
    out_res = jax.block_until_ready(
        swiglu_ffn_padded(x, *params, tm=1024, tk=128))
    assert out_res.shape == (B, S, dim)
    assert jnp.allclose(out_res, ref, atol=2e-2, rtol=2e-2), "resident mismatch"

    # 2) forced hidden-chunked path (tk=128 -> 2 k steps, f32 accumulator).
    out_chk = jax.block_until_ready(
        swiglu_ffn_padded(x, *params, tm=16, tk=128, weights_resident=False))
    assert jnp.allclose(out_chk, ref, atol=2e-2, rtol=2e-2), "chunked mismatch"

    # 3) chunked path with multiple row tiles + row padding (N=80 -> 3 tiles of 32).
    x2 = jax.random.normal(k_x2, (2, 40, dim), dtype=dtype)
    ref2 = reference_swiglu_ffn(x2, w_in, b_in, w_out, b_out)
    out2 = jax.block_until_ready(
        swiglu_ffn(x2, w_in, b_in, w_out, b_out, tm=32, tk=128,
                   weights_resident=False))
    assert out2.shape == x2.shape
    assert jnp.allclose(out2, ref2, atol=2e-2, rtol=2e-2), "multi-tile mismatch"

    print("KERNEL_OK")
</pallas_src>

<mosaic_0001>
module attributes {stable_mosaic.version = 11 : i64} {
  func.func @_swiglu_resident_kernel(%arg0: i32, %arg1: memref<16x128xbf16, #tpu.memory_space<vmem>>, %arg2: memref<128x256xbf16, #tpu.memory_space<vmem>>, %arg3: memref<1x256xf32, #tpu.memory_space<vmem>>, %arg4: memref<128x256xbf16, #tpu.memory_space<vmem>>, %arg5: memref<1x256xf32, #tpu.memory_space<vmem>>, %arg6: memref<256x128xbf16, #tpu.memory_space<vmem>>, %arg7: memref<1x128xf32, #tpu.memory_space<vmem>>, %arg8: memref<16x128xf32, #tpu.memory_space<vmem>>) attributes {dimension_semantics = [#tpu.dimension_semantics<parallel>], iteration_bounds = array<i64: 1>, scalar_prefetch = 0 : i64, scratch_operands = 0 : i64, tpu.core_type = #tpu.core_type<tc>, window_params = [{transform_indices = @transform_0, window_bounds = array<i64: 16, 128>}, {pipeline_mode = #tpu.pipeline_mode<synchronous>, transform_indices = @transform_1, window_bounds = array<i64: 128, 256>}, {pipeline_mode = #tpu.pipeline_mode<synchronous>, transform_indices = @transform_2, window_bounds = array<i64: 1, 256>}, {pipeline_mode = #tpu.pipeline_mode<synchronous>, transform_indices = @transform_3, window_bounds = array<i64: 128, 256>}, {pipeline_mode = #tpu.pipeline_mode<synchronous>, transform_indices = @transform_4, window_bounds = array<i64: 1, 256>}, {pipeline_mode = #tpu.pipeline_mode<synchronous>, transform_indices = @transform_5, window_bounds = array<i64: 256, 128>}, {pipeline_mode = #tpu.pipeline_mode<synchronous>, transform_indices = @transform_6, window_bounds = array<i64: 1, 128>}, {transform_indices = @transform_7, window_bounds = array<i64: 16, 128>}]} {
    %c0 = arith.constant 0 : index
    %c0_0 = arith.constant 0 : index
    %0 = vector.load %arg1[%c0, %c0_0] : memref<16x128xbf16, #tpu.memory_space<vmem>>, vector<16x128xbf16>
    %c0_1 = arith.constant 0 : index
    %c0_2 = arith.constant 0 : index
    %1 = vector.load %arg2[%c0_1, %c0_2] : memref<128x256xbf16, #tpu.memory_space<vmem>>, vector<128x256xbf16>
    %cst = arith.constant dense<0.000000e+00> : vector<16x256xf32>
    %2 = tpu.matmul %0, %1, %cst {dimension_numbers = #tpu.dot_dimension_numbers<[1], [0], [0], [1], [0, 0, 1, 1], [], []>} : vector<16x128xbf16>, vector<128x256xbf16>, vector<16x256xf32> -> vector<16x256xf32>
    %c0_3 = arith.constant 0 : index
    %c0_4 = arith.constant 0 : index
    %3 = vector.load %arg3[%c0_3, %c0_4] : memref<1x256xf32, #tpu.memory_space<vmem>>, vector<1x256xf32>
    %4 = vector.broadcast %3 : vector<1x256xf32> to vector<16x256xf32>
    %5 = arith.addf %2, %4 : vector<16x256xf32>
    %c0_5 = arith.constant 0 : index
    %c0_6 = arith.constant 0 : index
    %6 = vector.load %arg4[%c0_5, %c0_6] : memref<128x256xbf16, #tpu.memory_space<vmem>>, vector<128x256xbf16>
    %cst_7 = arith.constant dense<0.000000e+00> : vector<16x256xf32>
    %7 = tpu.matmul %0, %6, %cst_7 {dimension_numbers = #tpu.dot_dimension_numbers<[1], [0], [0], [1], [0, 0, 1, 1], [], []>} : vector<16x128xbf16>, vector<128x256xbf16>, vector<16x256xf32> -> vector<16x256xf32>
    %c0_8 = arith.constant 0 : index
    %c0_9 = arith.constant 0 : index
    %8 = vector.load %arg5[%c0_8, %c0_9] : memref<1x256xf32, #tpu.memory_space<vmem>>, vector<1x256xf32>
    %9 = vector.broadcast %8 : vector<1x256xf32> to vector<16x256xf32>
    %10 = arith.addf %7, %9 : vector<16x256xf32>
    %11 = arith.negf %5 : vector<16x256xf32>
    %12 = math.exp %11 : vector<16x256xf32>
    %cst_10 = arith.constant 1.000000e+00 : f32
    %13 = vector.broadcast %cst_10 : f32 to vector<16x256xf32>
    %14 = arith.addf %13, %12 : vector<16x256xf32>
    %15 = arith.divf %13, %14 : vector<16x256xf32>
    %16 = arith.mulf %5, %15 : vector<16x256xf32>
    %17 = arith.mulf %16, %10 : vector<16x256xf32>
    %18 = arith.truncf %17 : vector<16x256xf32> to vector<16x256xbf16>
    %c0_11 = arith.constant 0 : index
    %c0_12 = arith.constant 0 : index
    %19 = vector.load %arg6[%c0_11, %c0_12] : memref<256x128xbf16, #tpu.memory_space<vmem>>, vector<256x128xbf16>
    %cst_13 = arith.constant dense<0.000000e+00> : vector<16x128xf32>
    %20 = tpu.matmul %18, %19, %cst_13 {dimension_numbers = #tpu.dot_dimension_numbers<[1], [0], [0], [1], [0, 0, 1, 1], [], []>} : vector<16x256xbf16>, vector<256x128xbf16>, vector<16x128xf32> -> vector<16x128xf32>
    %c0_14 = arith.constant 0 : index
    %c0_15 = arith.constant 0 : index
    %21 = vector.load %arg7[%c0_14, %c0_15] : memref<1x128xf32, #tpu.memory_space<vmem>>, vector<1x128xf32>
    %22 = vector.broadcast %21 : vector<1x128xf32> to vector<16x128xf32>
    %23 = arith.addf %20, %22 : vector<16x128xf32>
    %c0_16 = arith.constant 0 : index
    %c0_17 = arith.constant 0 : index
    %24 = vector.load %arg8[%c0_16, %c0_17] : memref<16x128xf32, #tpu.memory_space<vmem>>, vector<16x128xf32>
    tpu.vector_store %arg8[%c0_16, %c0_17], %23 {strides = array<i32>} : memref<16x128xf32, #tpu.memory_space<vmem>>, vector<16x128xf32>,
    return
  }
  func.func @transform_0(%arg0: i32) -> (i32, i32) {
    %c0_i32 = arith.constant 0 : i32
    %c0_i32_0 = arith.constant 0 : i32
    return %arg0, %c0_i32 : i32, i32
  }
  func.func @transform_1(%arg0: i32) -> (i32, i32) {
    %c0_i32 = arith.constant 0 : i32
    %c0_i32_0 = arith.constant 0 : i32
    %c0_i32_1 = arith.constant 0 : i32
    return %c0_i32, %c0_i32_0 : i32, i32
  }
  func.func @transform_2(%arg0: i32) -> (i32, i32) {
    %c0_i32 = arith.constant 0 : i32
    %c0_i32_0 = arith.constant 0 : i32
    %c0_i32_1 = arith.constant 0 : i32
    return %c0_i32, %c0_i32_0 : i32, i32
  }
  func.func @transform_3(%arg0: i32) -> (i32, i32) {
    %c0_i32 = arith.constant 0 : i32
    %c0_i32_0 = arith.constant 0 : i32
    %c0_i32_1 = arith.constant 0 : i32
    return %c0_i32, %c0_i32_0 : i32, i32
  }
  func.func @transform_4(%arg0: i32) -> (i32, i32) {
    %c0_i32 = arith.constant 0 : i32
    %c0_i32_0 = arith.constant 0 : i32
    %c0_i32_1 = arith.constant 0 : i32
    return %c0_i32, %c0_i32_0 : i32, i32
  }
  func.func @transform_5(%arg0: i32) -> (i32, i32) {
    %c0_i32 = arith.constant 0 : i32
    %c0_i32_0 = arith.constant 0 : i32
    %c0_i32_1 = arith.constant 0 : i32
    return %c0_i32, %c0_i32_0 : i32, i32
  }
  func.func @transform_6(%arg0: i32) -> (i32, i32) {
    %c0_i32 = arith.constant 0 : i32
    %c0_i32_0 = arith.constant 0 : i32
    %c0_i32_1 = arith.constant 0 : i32
    return %c0_i32, %c0_i32_0 : i32, i32
  }
  func.func @transform_7(%arg0: i32) -> (i32, i32) {
    %c0_i32 = arith.constant 0 : i32
    %c0_i32_0 = arith.constant 0 : i32
    return %arg0, %c0_i32 : i32, i32
  }
}

</mosaic_0001>

<bundles_post_ra>
// kernel: swiglu_ffn_padded.1
= control target key start
LH: loop header
LB: loop body
LE: loop exit
PB: predicated region body
PF: predicated region fallthrough
CT: control target
= control target key end

     0   :  { %12 = vsyncpa [#allocation3], 0  ;;  %s1057_s0 = inlined_call_operand.vmem [shape: bf16[16,128], index: 0, kind: input, shape index: {}]   ;;  %s1058_s1 = inlined_call_operand.hbm [shape: bf16[128,256], index: 1, kind: input, shape index: {}]   ;;  %s1059_s2 = inlined_call_operand.vmem [shape: f32[1,256], index: 2, kind: input, shape index: {}]   ;;  %s1060_s3 = inlined_call_operand.hbm [shape: bf16[128,256], index: 3, kind: input, shape index: {}]   ;;  %s1061_s4 = inlined_call_operand.vmem [shape: f32[1,256], index: 4, kind: input, shape index: {}]   ;;  %s1062_s5 = inlined_call_operand.hbm [shape: bf16[256,128], index: 5, kind: input, shape index: {}]   ;;  %s1063_s6 = inlined_call_operand.vmem [shape: f32[1,128], index: 6, kind: input, shape index: {}]   ;;  %s1064_s7 = inlined_call_operand.vmem [shape: f32[16,128], index: 7, kind: output, shape index: {}]  }
   0x1   :  { %13 = vsyncpa [#allocation5], 0  ;;  %s35_s26 = sshll.u32 %s1060_s3, 4  ;;  %s944_s27 = smov [#allocation4]   ;;  %s36_s26 = int_to_ptr.hbm [resolvable:$true] %s35_s26 }
   0x2   :  { %s37_s28 = sshll.u32 %s944_s27, 4  ;;  %s20_s8 = sshll.u32 %s1058_s1, 4  ;;  %s38_s28 = int_to_ptr.vmem [resolvable:$true] %s37_s28  ;;  %s21_s8 = int_to_ptr.hbm [resolvable:$true] %s20_s8 }
   0x3   :  { %s945_s9 = smov 128   ;;  %s946_s10 = smov 8  }
   0x4   :  { %43 = dma.hbm_to_vmem [thread:$0]  %s36_s26, 2048, %s38_s28, [#allocation5], %s945_s9, %s945_s9, %s946_s10  }
   0x5   :  { %s947_s11 = smov [#allocation2]   ;;  %s50_s15 = sshll.u32 %s1062_s5, 4  ;;  %s51_s15 = int_to_ptr.hbm [resolvable:$true] %s50_s15 }
   0x6   :  { %s22_s12 = sshll.u32 %s947_s11, 4  ;;  %s948_s3 = smov [#allocation6]   ;;  %s23_s12 = int_to_ptr.vmem [resolvable:$true] %s22_s12 }
   0x7   :  { %28 = dma.hbm_to_vmem [thread:$0]  %s21_s8, 2048, %s23_s12, [#allocation3], %s945_s9, %s945_s9, %s946_s10  }
   0x8   :  { %s52_s16 = sshll.u32 %s948_s3, 4  ;;  %s949_s17 = smov 64   ;;  %s53_s16 = int_to_ptr.vmem [resolvable:$true] %s52_s16 }
   0x9   :  { %s950_s18 = smov 4  }
   0xa   :  { %58 = dma.hbm_to_vmem [thread:$0]  %s51_s15, 2048, %s53_s16, [#allocation5], %s949_s17, %s949_s17, %s950_s18  }
   0xb   :  { %940 = dma.done.wait [#allocation3], 2048  }
   0xc   :  { %941 = vsyncadd [#allocation3], 4294965248 }
   0xd   :  { %942 = dma.done.wait [#allocation5], 4096  }
   0xe   :  { %943 = vsyncadd [#allocation5], 4294963200  ;;  %v657_v0 = vld [vmem:[#allocation2 + $0x70] sm:$0xf]  ;;  %v811_v1 = vld [vmem:[#allocation2 + $0x74] sm:$0xf0] }
   0xf   :  { %v810_v2 = vld [vmem:[#allocation2 + $0x74] sm:$0xf]  ;;  %v658_v3 = vor.u32 %v811_v1, %v657_v0  ;;  %v659_v4 = vld [vmem:[#allocation2 + $0x78] sm:$0xf0]  ;;  %v649_v5 = vld [vmem:[#allocation2 + $0x60] sm:$0xf] }
  0x10   :  { %v809_v6 = vld [vmem:[#allocation2 + $0x64] sm:$0xf0]  ;;  %v662_v7 = vor.u32 %v810_v2, %v659_v4  ;;  %v808_v8 = vld [vmem:[#allocation2 + $0x64] sm:$0xf]  ;;  %v651_v9 = vld [vmem:[#allocation2 + $0x68] sm:$0xf0] }
  0x11   :  { %183 = vmatpush.bf16.msra.mxu0 %v658_v3  ;;  %v650_v10 = vor.u32 %v809_v6, %v649_v5  ;;  %v654_v11 = vor.u32 %v808_v8, %v651_v9  ;;  %v641_v12 = vld [vmem:[#allocation2 + $0x50] sm:$0xf]  ;;  %v807_v13 = vld [vmem:[#allocation2 + $0x54] sm:$0xf0]  ;;  %v806_v14 = vld [vmem:[#allocation2 + $0x54] sm:$0xf] }
  0x12   :  { %197 = vmatpush.bf16.msra.mxu1 %v662_v7  ;;  %v643_v15 = vld [vmem:[#allocation2 + $0x58] sm:$0xf0]  ;;  %v721_v16 = vld [vmem:[#allocation4 + $0x70] sm:$0xf]  ;;  %v642_v17 = vor.u32 %v807_v13, %v641_v12  ;;  %v827_v18 = vld [vmem:[#allocation4 + $0x74] sm:$0xf0] }
  0x13   :  { %v826_v19 = vld [vmem:[#allocation4 + $0x74] sm:$0xf]  ;;  %v723_v20 = vld [vmem:[#allocation4 + $0x78] sm:$0xf0]  ;;  %v646_v21 = vor.u32 %v806_v14, %v643_v15  ;;  %v633_v22 = vld [vmem:[#allocation2 + $0x40] sm:$0xf]  ;;  %v722_v25 = vor.u32 %v827_v18, %v721_v16 }
  0x14   :  { %v805_v23 = vld [vmem:[#allocation2 + $0x44] sm:$0xf0]  ;;  %v804_v24 = vld [vmem:[#allocation2 + $0x44] sm:$0xf]  ;;  %v726_v26 = vor.u32 %v826_v19, %v723_v20  ;;  %v635_v27 = vld [vmem:[#allocation2 + $0x48] sm:$0xf0] }
  0x15   :  { %184 = vmatpush.bf16.msra.mxu0 %v650_v10  ;;  %v713_v28 = vld [vmem:[#allocation4 + $0x60] sm:$0xf]  ;;  %v825_v29 = vld [vmem:[#allocation4 + $0x64] sm:$0xf0]  ;;  %313 = vmatpush.bf16.msra.mxu2 %v722_v25  ;;  %v824_v31 = vld [vmem:[#allocation4 + $0x64] sm:$0xf]  ;;  %v634_v33 = vor.u32 %v805_v23, %v633_v22  ;;  %v638_v37 = vor.u32 %v804_v24, %v635_v27 }
  0x16   :  { %198 = vmatpush.bf16.msra.mxu1 %v654_v11  ;;  %327 = vmatpush.bf16.msra.mxu3 %v726_v26  ;;  %v714_v30 = vor.u32 %v825_v29, %v713_v28  ;;  %v715_v32 = vld [vmem:[#allocation4 + $0x68] sm:$0xf0]  ;;  %v625_v34 = vld [vmem:[#allocation2 + $0x30] sm:$0xf]  ;;  %v803_v35 = vld [vmem:[#allocation2 + $0x34] sm:$0xf0] }
  0x17   :  { %v718_v36 = vor.u32 %v824_v31, %v715_v32  ;;  %v705_v38 = vld [vmem:[#allocation4 + $0x50] sm:$0xf]  ;;  %v823_v39 = vld [vmem:[#allocation4 + $0x54] sm:$0xf0]  ;;  %v822_v40 = vld [vmem:[#allocation4 + $0x54] sm:$0xf]  ;;  %v626_v47 = vor.u32 %v803_v35, %v625_v34 }
  0x18   :  { %v802_v41 = vld [vmem:[#allocation2 + $0x34] sm:$0xf]  ;;  %v627_v42 = vld [vmem:[#allocation2 + $0x38] sm:$0xf0]  ;;  %v706_v44 = vor.u32 %v823_v39, %v705_v38  ;;  %v697_v46 = vld [vmem:[#allocation4 + $0x40] sm:$0xf] }
  0x19   :  { %185 = vmatpush.bf16.msra.mxu0 %v642_v17  ;;  %v707_v43 = vld [vmem:[#allocation4 + $0x58] sm:$0xf0]  ;;  %314 = vmatpush.bf16.msra.mxu2 %v714_v30  ;;  %v821_v48 = vld [vmem:[#allocation4 + $0x44] sm:$0xf0]  ;;  %v820_v49 = vld [vmem:[#allocation4 + $0x44] sm:$0xf]  ;;  %v630_v51 = vor.u32 %v802_v41, %v627_v42 }
  0x1a   :  { %199 = vmatpush.bf16.msra.mxu1 %v646_v21  ;;  %328 = vmatpush.bf16.msra.mxu3 %v718_v36  ;;  %v710_v45 = vor.u32 %v822_v40, %v707_v43  ;;  %v699_v50 = vld [vmem:[#allocation4 + $0x48] sm:$0xf0]  ;;  %v617_v52 = vld [vmem:[#allocation2 + $0x20] sm:$0xf]  ;;  %v801_v53 = vld [vmem:[#allocation2 + $0x24] sm:$0xf0]  ;;  %v698_v56 = vor.u32 %v821_v48, %v697_v46 }
  0x1b   :  { %v800_v54 = vld [vmem:[#allocation2 + $0x24] sm:$0xf]  ;;  %v619_v55 = vld [vmem:[#allocation2 + $0x28] sm:$0xf0]  ;;  %v702_v57 = vor.u32 %v820_v49, %v699_v50  ;;  %v689_v58 = vld [vmem:[#allocation4 + $0x30] sm:$0xf]  ;;  %v618_v59 = vor.u32 %v801_v53, %v617_v52 }
  0x1c   :  { %v819_v60 = vld [vmem:[#allocation4 + $0x34] sm:$0xf0]  ;;  %v818_v61 = vld [vmem:[#allocation4 + $0x34] sm:$0xf]  ;;  %v691_v62 = vld [vmem:[#allocation4 + $0x38] sm:$0xf0]  ;;  %v622_v63 = vor.u32 %v800_v54, %v619_v55 }
  0x1d   :  { %186 = vmatpush.bf16.msra.mxu0 %v634_v33  ;;  %315 = vmatpush.bf16.msra.mxu2 %v706_v44  ;;  %v609_v0 = vld [vmem:[#allocation2 + $0x10] sm:$0xf]  ;;  %v799_v1 = vld [vmem:[#allocation2 + $0x14] sm:$0xf0]  ;;  %v798_v2 = vld [vmem:[#allocation2 + $0x14] sm:$0xf]  ;;  %v690_v4 = vor.u32 %v819_v60, %v689_v58  ;;  %v694_v5 = vor.u32 %v818_v61, %v691_v62 }
  0x1e   :  { %200 = vmatpush.bf16.msra.mxu1 %v638_v37  ;;  %329 = vmatpush.bf16.msra.mxu3 %v710_v45  ;;  %v611_v3 = vld [vmem:[#allocation2 + $0x18] sm:$0xf0]  ;;  %v681_v6 = vld [vmem:[#allocation4 + $0x20] sm:$0xf]  ;;  %v610_v7 = vor.u32 %v799_v1, %v609_v0  ;;  %v817_v8 = vld [vmem:[#allocation4 + $0x24] sm:$0xf0] }
  0x1f   :  { %v816_v9 = vld [vmem:[#allocation4 + $0x24] sm:$0xf]  ;;  %v683_v10 = vld [vmem:[#allocation4 + $0x28] sm:$0xf0]  ;;  %v614_v11 = vor.u32 %v798_v2, %v611_v3  ;;  %v601_v12 = vld [vmem:[#allocation2] sm:$0xf]  ;;  %v682_v16 = vor.u32 %v817_v8, %v681_v6 }
  0x20   :  { %v797_v13 = vld [vmem:[#allocation2 + $0x4] sm:$0xf0]  ;;  %v796_v14 = vld [vmem:[#allocation2 + $0x4] sm:$0xf]  ;;  %v603_v15 = vld [vmem:[#allocation2 + $0x8] sm:$0xf0]  ;;  %v686_v17 = vor.u32 %v816_v9, %v683_v10 }
  0x21   :  { %187 = vmatpush.bf16.msra.mxu0 %v626_v47  ;;  %316 = vmatpush.bf16.msra.mxu2 %v698_v56  ;;  %v602_v18 = vor.u32 %v797_v13, %v601_v12  ;;  %v673_v19 = vld [vmem:[#allocation4 + $0x10] sm:$0xf]  ;;  %v815_v20 = vld [vmem:[#allocation4 + $0x14] sm:$0xf0]  ;;  %v606_v21 = vor.u32 %v796_v14, %v603_v15  ;;  %v814_v22 = vld [vmem:[#allocation4 + $0x14] sm:$0xf] }
  0x22   :  { %201 = vmatpush.bf16.msra.mxu1 %v630_v51  ;;  %330 = vmatpush.bf16.msra.mxu3 %v702_v57  ;;  %v675_v23 = vld [vmem:[#allocation4 + $0x18] sm:$0xf0]  ;;  %v795_v24 = vld [vmem:[%s1057_s0] sm:$0xff]  ;;  %v674_v25 = vor.u32 %v815_v20, %v673_v19  ;;  %v813_v28 = vld [vmem:[#allocation4 + $0x4] sm:$0xf0] }
  0x23   :  { %v678_v26 = vor.u32 %v814_v22, %v675_v23  ;;  %v665_v27 = vld [vmem:[#allocation4] sm:$0xf]  ;;  %v812_v29 = vld [vmem:[#allocation4 + $0x4] sm:$0xf]  ;;  %v667_v30 = vld [vmem:[#allocation4 + $0x8] sm:$0xf0] }
  0x24   :  { %v666_v31 = vor.u32 %v813_v28, %v665_v27  ;;  %v670_v32 = vor.u32 %v812_v29, %v667_v30  ;;  %v835_v33 = vld [vmem:[#allocation6 + $0x38] sm:$0xff]  ;;  %v834_v35 = vld [vmem:[#allocation6 + $0x30] sm:$0xff]  ;;  %v833_v37 = vld [vmem:[#allocation6 + $0x28] sm:$0xff] }
  0x25   :  { %188 = vmatpush.bf16.msra.mxu0 %v618_v59  ;;  %317 = vmatpush.bf16.msra.mxu2 %v690_v4  ;;  %v843_v34 = vld [vmem:[#allocation6 + $0x78] sm:$0xff]  ;;  %v842_v36 = vld [vmem:[#allocation6 + $0x70] sm:$0xff]  ;;  %v841_v38 = vld [vmem:[#allocation6 + $0x68] sm:$0xff] }
  0x26   :  { %202 = vmatpush.bf16.msra.mxu1 %v622_v63  ;;  %331 = vmatpush.bf16.msra.mxu3 %v694_v5  ;;  %v91_v39 = vld [vmem:[%s1059_s2] sm:$0x3]  ;;  %v831_v45 = vld [vmem:[#allocation6 + $0x18] sm:$0xff]  ;;  %v830_v52 = vld [vmem:[#allocation6 + $0x10] sm:$0xff] }
  0x27   :  { %v832_v40 = vld [vmem:[#allocation6 + $0x20] sm:$0xff]  ;;  %v93_v42 = vperm.slane %v91_v39, 0  ;;  %v94_v43 = vperm.slane %v91_v39, 1  ;;  %v839_v46 = vld [vmem:[#allocation6 + $0x58] sm:$0xff]  ;;  %v838_v53 = vld [vmem:[#allocation6 + $0x50] sm:$0xff] }
  0x28   :  { %v840_v41 = vld [vmem:[#allocation6 + $0x60] sm:$0xff]  ;;  %v829_v55 = vld [vmem:[#allocation6 + $0x8] sm:$0xff] }
  0x29   :  { %189 = vmatpush.bf16.msra.mxu0 %v610_v7  ;;  %318 = vmatpush.bf16.msra.mxu2 %v682_v16  ;;  %v837_v56 = vld [vmem:[#allocation6 + $0x48] sm:$0xff]  ;;  %v828_v1 = vld [vmem:[#allocation6] sm:$0xff] }
  0x2a   :  { %203 = vmatpush.bf16.msra.mxu1 %v614_v11  ;;  %332 = vmatpush.bf16.msra.mxu3 %v686_v17  ;;  %v836_v2 = vld [vmem:[#allocation6 + $0x40] sm:$0xff] }
  0x2b   :  { %v1024_v16 = vld [vmem:[%s1061_s4] sm:$0x3] }
  0x2c   :  { %v229_v23 = vperm.slane %v1024_v16, 0  ;;  %v230_v28 = vperm.slane %v1024_v16, 1 }
  0x2d   :  { %190 = vmatpush.bf16.msra.mxu0 %v602_v18  ;;  %319 = vmatpush.bf16.msra.mxu2 %v674_v25 }
  0x2e   :  { %204 = vmatpush.bf16.msra.mxu1 %v606_v21  ;;  %333 = vmatpush.bf16.msra.mxu3 %v678_v26 }
  0x30   :  { %191 = vmatmul.bf16.vlgmr.msra.gmra.mxu0 %v795_v24 }
  0x31   :  { %205 = vmatmul.bf16.vlgmr.msra.gmra.mxu1 %v795_v24  ;;  %320 = vmatpush.bf16.msra.mxu2 %v666_v31 }
  0x32   :  { %334 = vmatpush.bf16.msra.mxu3 %v670_v32  ;;  %559 = vmatpush.bf16.msrb.mxu0 %v835_v33 }
  0x33   :  { %573 = vmatpush.bf16.msrb.mxu1 %v843_v34 }
  0x34   :  { %321 = vmatmul.bf16.vlgmr.msra.gmra.mxu2 %v795_v24 }
  0x35   :  { %335 = vmatmul.bf16.vlgmr.msra.gmra.mxu3 %v795_v24 }
  0x36   :  { %560 = vmatpush.bf16.msrb.mxu0 %v834_v35 }
  0x37   :  { %574 = vmatpush.bf16.msrb.mxu1 %v842_v36 }
  0x3a   :  { %561 = vmatpush.bf16.msrb.mxu0 %v833_v37 }
  0x3b   :  { %575 = vmatpush.bf16.msrb.mxu1 %v841_v38 }
  0x3e   :  { %562 = vmatpush.bf16.msrb.mxu0 %v832_v40 }
  0x3f   :  { %576 = vmatpush.bf16.msrb.mxu1 %v840_v41 }
  0x42   :  { %563 = vmatpush.bf16.msrb.mxu0 %v831_v45 }
  0x43   :  { %577 = vmatpush.bf16.msrb.mxu1 %v839_v46 }
  0x46   :  { %564 = vmatpush.bf16.msrb.mxu0 %v830_v52 }
  0x47   :  { %578 = vmatpush.bf16.msrb.mxu1 %v838_v53 }
  0x4a   :  { %565 = vmatpush.bf16.msrb.mxu0 %v829_v55 }
  0x4b   :  { %579 = vmatpush.bf16.msrb.mxu1 %v837_v56 }
  0x4e   :  { %566 = vmatpush.bf16.msrb.mxu0 %v828_v1 }
  0x4f   :  { %580 = vmatpush.bf16.msrb.mxu1 %v836_v2 }
  0xad   :  { %v192_v44 = vpop.f32.mrf.mxu0 }
  0xae   :  { %v1006_v47 = vadd.f32 %v192_v44, %v93_v42  ;;  %v206_v48 = vpop.f32.mrf.mxu1 }
  0xaf   :  { %v1008_v49 = vadd.f32 %v206_v48, %v94_v43 }
  0xb0   :  { %v727_v50 = vmul.f32 -1.442695, %v1006_v47 }
  0xb1   :  { %v728_v51 = vmul.f32 -1.442695, %v1008_v49 }
  0xb2   :  { %852 = vpow2.f32 %v727_v50 }
  0xb3   :  { %854 = vpow2.f32 %v728_v51 }
  0xb5   :  { %v194_v54 = vpop.f32.mrf.mxu0 }
  0xb6   :  { %v1012_v57 = vadd.f32 %v194_v54, %v93_v42  ;;  %v208_v58 = vpop.f32.mrf.mxu1 }
  0xb7   :  { %v1014_v59 = vadd.f32 %v208_v58, %v94_v43  ;;  %v322_v17 = vpop.f32.mrf.mxu2 }
  0xb8   :  { %v853_v60 = vpop.eup %852  ;;  %v729_v61 = vmul.f32 -1.442695, %v1012_v57  ;;  %v336_v24 = vpop.f32.mrf.mxu3  ;;  %v323_v39 = vadd.f32 %v322_v17, %v229_v23 }
  0xb9   :  { %v855_v62 = vpop.eup %854  ;;  %v353_v63 = vadd.f32 1.0, %v853_v60  ;;  %v730_v0 = vmul.f32 -1.442695, %v1014_v59  ;;  %v337_v1 = vadd.f32 %v336_v24, %v230_v28 }
  0xba   :  { %v354_v3 = vadd.f32 1.0, %v855_v62  ;;  %856 = vpow2.f32 %v729_v61 }
  0xbb   :  { %858 = vrcp.f32 %v353_v63  ;;  %v366_v20 = vand.u32 2147483647, %v353_v63  ;;  %v368_v21 = vand.u32 2147483648, %v353_v63  ;;  %vm362_vm1 = vweird.f32 %v353_v63 }
  0xbc   :  { %860 = vrcp.f32 %v354_v3  ;;  %v381_v27 = vand.u32 2147483647, %v354_v3  ;;  %vm377_vm4 = vweird.f32 %v354_v3  ;;  %v383_v31 = vand.u32 2147483648, %v354_v3 }
  0xbd   :  { %862 = vpow2.f32 %v730_v0  ;;  %vm367_vm5 = vcmp.eq.f32.partialorder %v366_v20, 8.507059e+37  ;;  %v369_v33 = vor.u32 1.1754944e-38, %v368_v21 }
  0xbe   :  { %vm382_vm8 = vcmp.eq.f32.partialorder %v381_v27, 8.507059e+37  ;;  %v384_v43 = vor.u32 1.1754944e-38, %v383_v31 }
  0xbf   :  { %v324_v51 = vpop.f32.mrf.mxu2 }
  0xc0   :  { %v857_v4 = vpop.eup %856  ;;  %v325_v61 = vadd.f32 %v324_v51, %v229_v23  ;;  %v338_v62 = vpop.f32.mrf.mxu3 }
  0xc1   :  { %v859_v5 = vpop.eup %858  ;;  %v355_v6 = vadd.f32 1.0, %v857_v4 }
  0xc2   :  { %v861_v7 = vpop.eup %860  ;;  %v358_v8 = vmul.f32 %v859_v5, %v353_v63  ;;  %vm363_vm0 = vweird.f32 %v859_v5 }
  0xc3   :  { %v863_v9 = vpop.eup %862  ;;  %v373_v10 = vmul.f32 %v861_v7, %v354_v3  ;;  %864 = vrcp.f32 %v355_v6  ;;  %vm1027_vm2 = vmor %vm362_vm1, %vm363_vm0  ;;  %vm378_vm3 = vweird.f32 %v861_v7  ;;  %v398_v34 = vand.u32 2147483648, %v355_v6 }
  0xc4   :  { %v359_v11 = vsub.f32 1.0, %v358_v8  ;;  %v1018_v12 = vadd.f32 1.0, %v863_v9  ;;  %vm1035_vm6 = vmor %vm377_vm4, %vm378_vm3  ;;  %v396_v38 = vand.u32 2147483647, %v355_v6  ;;  %vm392_vm9 = vweird.f32 %v355_v6  ;;  %v851_v9 = vld [vmem:[%s1063_s6] ss:$0 sm:$0xff] }
  0xc5   :  { %v374_v13 = vsub.f32 1.0, %v373_v10  ;;  %v399_v46 = vor.u32 1.1754944e-38, %v398_v34 }
  0xc6   :  { %v360_v14 = vmul.f32 %v859_v5, %v359_v11  ;;  %866 = vrcp.f32 %v1018_v12  ;;  %v413_v45 = vand.u32 2147483648, %v1018_v12  ;;  %v411_v50 = vand.u32 2147483647, %v1018_v12 }
  0xc7   :  { %v375_v15 = vmul.f32 %v861_v7, %v374_v13  ;;  %vm397_vm12 = vcmp.eq.f32.partialorder %v396_v38, 8.507059e+37  ;;  %vm407_vm13 = vweird.f32 %v1018_v12 }
  0xc8   :  { %v361_v18 = vadd.f32 %v859_v5, %v360_v14  ;;  %v414_v60 = vor.u32 1.1754944e-38, %v413_v45  ;;  %vm412_vm15 = vcmp.eq.f32.partialorder %v411_v50, 8.507059e+37 }
  0xc9   :  { %v865_v19 = vpop.eup %864  ;;  %v376_v26 = vadd.f32 %v861_v7, %v375_v15 }
  0xca   :  { %v388_v22 = vmul.f32 %v865_v19, %v355_v6  ;;  %v365_v30 = vsel %vm1027_vm2, %v859_v5, %v361_v18  ;;  %vm393_vm7 = vweird.f32 %v865_v19  ;;  %v339_v5 = vadd.f32 %v338_v62, %v230_v28 }
  0xcb   :  { %v370_v40 = vsel %vm367_vm5, %v369_v33, %v365_v30  ;;  %v380_v41 = vsel %vm1035_vm6, %v861_v7, %v376_v26  ;;  %vm394_vm10 = vmor %vm392_vm9, %vm393_vm7 }
  0xcc   :  { %v867_v29 = vpop.eup %866  ;;  %v389_v32 = vsub.f32 1.0, %v388_v22  ;;  %v417_v52 = vmul.f32 %v370_v40, %v1006_v47  ;;  %v385_v53 = vsel %vm382_vm8, %v384_v43, %v380_v41 }
  0xcd   :  { %v403_v35 = vmul.f32 %v867_v29, %v1018_v12  ;;  %vm408_vm11 = vweird.f32 %v867_v29  ;;  %v418_v63 = vmul.f32 %v385_v53, %v1008_v49 }
  0xce   :  { %v390_v37 = vmul.f32 %v865_v19, %v389_v32  ;;  %vm409_vm14 = vmor %vm407_vm13, %vm408_vm11  ;;  %v421_v47 = vmul.f32 %v417_v52, %v323_v39 }
  0xcf   :  { %v404_v42 = vsub.f32 1.0, %v403_v35  ;;  %v422_v7 = vmul.f32 %v418_v63, %v337_v1 }
  0xd0   :  { %v391_v44 = vadd.f32 %v865_v19, %v390_v37 }
  0xd1   :  { %v405_v48 = vmul.f32 %v867_v29, %v404_v42 }
  0xd2   :  { %v395_v54 = vsel %vm394_vm10, %v865_v19, %v391_v44 }
  0xd3   :  { %v400_v55 = vsel %vm397_vm12, %v399_v46, %v395_v54  ;;  %v406_v56 = vadd.f32 %v867_v29, %v405_v48 }
  0xd4   :  { %v419_v58 = vmul.f32 %v400_v55, %v1012_v57 }
  0xd5   :  { %v410_v0 = vsel %vm409_vm14, %v867_v29, %v406_v56 }
  0xd6   :  { %v415_v2 = vsel %vm412_vm15, %v414_v60, %v410_v0  ;;  %v423_v3 = vmul.f32 %v419_v58, %v325_v61 }
  0xd7   :  { %v420_v4 = vmul.f32 %v415_v2, %v1014_v59 }
  0xd8   :  { %v425_v6 = vpack.c.bf16 %v423_v3, %v421_v47 }
  0xd9   :  { %v424_v8 = vmul.f32 %v420_v4, %v339_v5 }
  0xda   :  { %567 = vmatmul.bf16.vlgmr.msrb.gmra.mxu0 %v425_v6 }
  0xdb   :  { %v426_v57 = vpack.c.bf16 %v424_v8, %v422_v7 }
  0xdd   :  { %581 = vmatmul.bf16.vlgmr.msrb.gmra.mxu1 %v426_v57 }
 0x157   :  { %v568_v49 = vpop.f32.mrf.mxu0 }
 0x158   :  { %v569_v10 = vadd.f32 %v851_v9, %v568_v49 }
 0x15a   :  { %v582_v11 = vpop.f32.mrf.mxu1 }
 0x15b   :  { %v583_v12 = vadd.f32 %v582_v11, %v569_v10 }
 0x15d   :  { %587 = vst [vmem:[%s1064_s7] sm:$0xff] %v583_v12 }
 0x15f   :  { %v570_v59 = vpop.f32.mrf.mxu0 }
 0x160   :  { %v571_v13 = vadd.f32 %v851_v9, %v570_v59 }
 0x162   :  { %v584_v14 = vpop.f32.mrf.mxu1 }
 0x163   :  { %v585_v15 = vadd.f32 %v584_v14, %v571_v13 }
 0x165   :  { %588 = vst [vmem:[%s1064_s7 + $0x8] sm:$0xff] %v585_v15 }
 0x166   :  { %593 = vsyncpa [#allocation3], 1 }
 0x167   :  { %594 = vsyncpa [#allocation5], 1 }

</bundles_post_ra>
